<compile_context>
chip_gen: v7x
topology: tpu7x:2x2x1
jax: 0.10.0
libtpu: 0.0.40
codegen_flags: <defaults>
</compile_context>

<pallas_src>
import functools

import jax
import jax.numpy as jnp
from jax.experimental import pallas as pl
from jax.experimental.pallas import tpu as pltpu

_ADJ_SCALE = 127.0  # static int8 quantization scale for gcn_norm values in [0,1]


def _mgcn_kernel(adj_q_ref,          # VMEM (G, n, n) int8 : quantized normalized adjacency
                 x_ref,              # VMEM (G, 1, n) bf16  (d==1, lane-dense)  or (G, n, d) bf16
                 grow_ref,           # VMEM (G, 1, n) bf16 : pre-gathered gene-node adjacency row
                 mask_ref,           # VMEM (G, n, 16) int8: dropout keep mask (0/1)
                 w1_ref, b1_ref,     # (d, 16), (1, 16)  f32
                 w2_ref, b2_ref,     # (16, 16), (1, 16) f32
                 wf1_ref, bf1_ref,   # (16, 8), (1, 8)   f32
                 wf2_ref, bf2_ref,   # (8, 1),  (1, 1)   f32
                 out_ref,            # VMEM (G, 1) f32
                 *, d, inv_adj_scale, inv_keep):
    # Dequantize adjacency on the VPU (hidden under the adj DMA / MXU phases).
    adj = adj_q_ref[...].astype(jnp.bfloat16)                       # (G, n, n)
    G = adj.shape[0]

    # ---- GCN layer 1: Anorm @ (x @ W1) + b1, ReLU, dropout ----
    if d == 1:
        # Associativity: Anorm @ (x w1^T) == (Anorm @ x) outer w1.
        # One bf16 MXU matvec per graph, then a cheap VPU broadcast multiply.
        v = jnp.einsum("gij,gkj->gik", adj, x_ref[...],
                       preferred_element_type=jnp.float32)          # (G, n, 1)
        h = (v * inv_adj_scale) * w1_ref[...].reshape(1, 1, 16) \
            + b1_ref[...].reshape(1, 1, 16)                         # (G, n, 16)
    else:
        w1b = jnp.broadcast_to(w1_ref[...].astype(jnp.bfloat16), (G, d, 16))
        xw = jnp.einsum("gnd,gdf->gnf", x_ref[...], w1b,
                        preferred_element_type=jnp.float32)         # (G, n, 16)
        agg = jnp.einsum("gij,gjf->gif", adj, xw.astype(jnp.bfloat16),
                         preferred_element_type=jnp.float32)
        h = agg * inv_adj_scale + b1_ref[...].reshape(1, 1, 16)
    h = jnp.maximum(h, 0.0)
    # F.dropout(p=0.4, training=True) via precomputed 0/1 keep mask.
    h = h * (mask_ref[...].astype(jnp.float32) * inv_keep)          # (G, n, 16)

    # ---- GCN layer 2, gene-node row only (associativity) ----
    #   h2[gi] = relu( (A[gi,:] @ h) @ W2 + b2 )
    r = jnp.einsum("gkj,gjf->gkf", grow_ref[...], h.astype(jnp.bfloat16),
                   preferred_element_type=jnp.float32)              # (G, 1, 16)
    row = jnp.maximum(
        jnp.dot(r[:, 0, :], w2_ref[...], preferred_element_type=jnp.float32)
        + b2_ref[...], 0.0)                                         # (G, 16)

    # ---- MLP head: fc1 -> ReLU -> fc2 ----
    t = jnp.maximum(
        jnp.dot(row, wf1_ref[...], preferred_element_type=jnp.float32)
        + bf1_ref[...], 0.0)                                        # (G, 8)
    out_ref[...] = (jnp.dot(t, wf2_ref[...], preferred_element_type=jnp.float32)
                    + bf2_ref[...])                                 # (G, 1)


def multi_gcn_inference(x, adj, gene_local, params, keep_mask, *,
                        dropout_p=0.4, graphs_per_step=None):
    """Forward pass.

    x           : (B, n, d)  f32   per-graph node features
    adj         : (B, n, n)  f32   per-graph normalized adjacency (gcn_norm)
    gene_local  : (B,)       int   local gene-node index within each graph
    keep_mask   : (B, n, 16) bool/int  dropout keep mask (0/1), p = dropout_p
    returns     : (B, 1)     f32
    """
    B, n, d = x.shape

    # Clamp gene indices in the wrapper — no OOB reads anywhere downstream.
    gene_local = jnp.clip(gene_local.astype(jnp.int32), 0, n - 1)

    # int8 adjacency (values in [0,1]); dequant scale applied in-kernel.
    adj_q = jnp.round(jnp.clip(adj, 0.0, 1.0) * _ADJ_SCALE).astype(jnp.int8)

    # Pre-gathered, unquantized gene-node adjacency rows: (B, 1, n) bf16.
    gene_rows = adj[jnp.arange(B), gene_local][:, None, :].astype(jnp.bfloat16)

    # Lane-dense features for the d==1 fast path; plain (B, n, d) otherwise.
    if d == 1:
        x_in = jnp.transpose(x, (0, 2, 1)).astype(jnp.bfloat16)     # (B, 1, n)
        x_block = (None, 1, n)
    else:
        x_in = x.astype(jnp.bfloat16)                               # (B, n, d)
        x_block = (None, n, d)

    mask_i8 = keep_mask.astype(jnp.int8)                            # (B, n, 16)

    # ---- choose graphs-per-step G against a double-buffered VMEM budget ----
    def _bytes(a):  # per-graph slice bytes (unpadded estimate)
        return a[0].size * a.dtype.itemsize
    per_graph = _bytes(adj_q) + _bytes(x_in) + _bytes(gene_rows) + _bytes(mask_i8)
    if graphs_per_step is None:
        budget = 24 * 1024 * 1024          # headroom below the 32 MiB limit set below
        G = 1
        for g in range(1, min(B, 8) + 1):
            if B % g == 0 and 2 * g * per_graph <= budget:
                G = g
    else:
        G = int(graphs_per_step)
        assert B % G == 0, "graphs_per_step must divide the batch size"

    # Fix the leading G dim of the x block now that G is known.
    x_block = (G,) + x_block[1:]

    kernel = functools.partial(
        _mgcn_kernel, d=d,
        inv_adj_scale=float(1.0 / _ADJ_SCALE),
        inv_keep=float(1.0 / (1.0 - dropout_p)))

    grid_spec = pltpu.PrefetchScalarGridSpec(
        num_scalar_prefetch=0,
        grid=(B // G,),
        in_specs=[
            pl.BlockSpec((G, n, n), lambda b: (b, 0, 0)),     # adjacency (int8)
            pl.BlockSpec(x_block, lambda b: (b, 0, 0)),       # features (bf16)
            pl.BlockSpec((G, 1, n), lambda b: (b, 0, 0)),     # gene-node adj rows (bf16)
            pl.BlockSpec((G, n, 16), lambda b: (b, 0, 0)),    # dropout keep mask (int8)
            pl.BlockSpec((d, 16), lambda b: (0, 0)),          # W1
            pl.BlockSpec((1, 16), lambda b: (0, 0)),          # b1
            pl.BlockSpec((16, 16), lambda b: (0, 0)),         # W2
            pl.BlockSpec((1, 16), lambda b: (0, 0)),          # b2
            pl.BlockSpec((16, 8), lambda b: (0, 0)),          # Wf1
            pl.BlockSpec((1, 8), lambda b: (0, 0)),           # bf1
            pl.BlockSpec((8, 1), lambda b: (0, 0)),           # Wf2
            pl.BlockSpec((1, 1), lambda b: (0, 0)),           # bf2
        ],
        out_specs=pl.BlockSpec((G, 1), lambda b: (b, 0)),
    )

    return pl.pallas_call(
        kernel,
        out_shape=jax.ShapeDtypeStruct((B, 1), jnp.float32),
        grid_spec=grid_spec,
        compiler_params=pltpu.CompilerParams(
            dimension_semantics=("parallel",),     # independent graphs (2 TCs on v7x)
            vmem_limit_bytes=32 * 1024 * 1024,     # fits v7x's 64 MiB; G chosen to stay under
        ),
    )(adj_q, x_in, gene_rows, mask_i8,
      params["w1"], params["b1"], params["w2"], params["b2"],
      params["wf1"], params["bf1"], params["wf2"], params["bf2"])


# ----------------------------- glue (plain JAX) -----------------------------

def dense_gcn_norm(edge_index_local, num_nodes):
    """D^{-1/2} (A + I) D^{-1/2} for one graph (PyG gcn_norm semantics)."""
    src, dst = edge_index_local
    a = jnp.zeros((num_nodes, num_nodes), jnp.float32).at[dst, src].set(1.0)
    a = jnp.maximum(a, jnp.eye(num_nodes, dtype=jnp.float32))   # add self loops
    deg = a.sum(axis=1)
    dinv = jnp.where(deg > 0, 1.0 / jnp.sqrt(deg), 0.0)
    return dinv[:, None] * a * dinv[None, :]


def init_params(key, d):
    ks = jax.random.split(key, 4)
    s = lambda k, shp, fan_in: (jax.random.normal(k, shp, jnp.float32)
                                / jnp.sqrt(jnp.float32(fan_in)))
    return {
        "w1":  s(ks[0], (d, 16), d),   "b1":  jnp.zeros((1, 16), jnp.float32),
        "w2":  s(ks[1], (16, 16), 16), "b2":  jnp.zeros((1, 16), jnp.float32),
        "wf1": s(ks[2], (16, 8), 16),  "bf1": 0.01 * jnp.ones((1, 8), jnp.float32),
        "wf2": s(ks[3], (8, 1), 8),    "bf2": 0.01 * jnp.ones((1, 1), jnp.float32),
    }


def reference_forward(x, adj, gene_local, params, keep_mask, dropout_p):
    """Pure-JAX f32 reference on the stacked (block-diagonal) batch."""
    xw = jnp.einsum("bnd,df->bnf", x, params["w1"])
    h = jnp.maximum(jnp.einsum("bij,bjf->bif", adj, xw) + params["b1"], 0.0)
    h = h * keep_mask.astype(jnp.float32) / (1.0 - dropout_p)
    hw = jnp.einsum("bnf,fg->bng", h, params["w2"])
    h2 = jnp.maximum(jnp.einsum("bij,bjf->bif", adj, hw) + params["b2"], 0.0)
    g = h2[jnp.arange(x.shape[0]), gene_local]                  # (B, 16)
    g = jnp.maximum(g @ params["wf1"] + params["bf1"], 0.0)
    return g @ params["wf2"] + params["bf2"]


if __name__ == "__main__":
    key = jax.random.PRNGKey(0)
    k_x, k_p, k_drop, k_gene = jax.random.split(key, 4)

    batch = 2                # graphs in the batch (y.size(0) in the reference)
    nodes_per_graph = 16     # stands in for the hard-coded 1431
    d = 1                    # input feature dim (module default)

    # per-graph node features
    x = jax.random.normal(k_x, (batch, nodes_per_graph, d), jnp.float32)

    # per-graph ring topology plus a per-graph chord (graphs differ slightly)
    adjs = []
    for b in range(batch):
        src, dst = [], []
        for i in range(nodes_per_graph):
            j = (i + 1) % nodes_per_graph
            src += [i, j]
            dst += [j, i]
        c = (2 + 3 * b) % nodes_per_graph
        src += [0, c]
        dst += [c, 0]
        ei = jnp.array([src, dst], dtype=jnp.int32)
        adjs.append(dense_gcn_norm(ei, nodes_per_graph))
    adj = jnp.stack(adjs)                                        # (B, n, n) f32

    # local gene-node index per graph (== gene_node[i] of the flattened batch)
    gene_local = jax.random.randint(k_gene, (batch,), 0, nodes_per_graph).astype(jnp.int32)

    # dropout p=0.4 keep mask (0/1), deterministic via PRNGKey
    p = 0.4
    keep_mask = jax.random.bernoulli(k_drop, 1.0 - p, (batch, nodes_per_graph, 16))

    params = init_params(k_p, d)

    out = multi_gcn_inference(x, adj, gene_local, params, keep_mask, dropout_p=p)
    out = jax.block_until_ready(out)

    ref = reference_forward(x, adj, gene_local, params, keep_mask, p)
    assert out.shape == (batch, 1)
    # int8 adjacency + bf16 MXU aggregation in the kernel -> loosened tolerance
    # vs the pure-f32 reference.
    assert jnp.allclose(out, ref, atol=7.5e-2, rtol=7.5e-2), (out, ref)

    print("KERNEL_OK")
</pallas_src>

<mosaic_0001>
module attributes {stable_mosaic.version = 11 : i64} {
  func.func @_mgcn_kernel(%arg0: i32, %arg1: memref<2x16x16xi8, #tpu.memory_space<vmem>>, %arg2: memref<2x1x16xbf16, #tpu.memory_space<vmem>>, %arg3: memref<2x1x16xbf16, #tpu.memory_space<vmem>>, %arg4: memref<2x16x16xi8, #tpu.memory_space<vmem>>, %arg5: memref<1x16xf32, #tpu.memory_space<vmem>>, %arg6: memref<1x16xf32, #tpu.memory_space<vmem>>, %arg7: memref<16x16xf32, #tpu.memory_space<vmem>>, %arg8: memref<1x16xf32, #tpu.memory_space<vmem>>, %arg9: memref<16x8xf32, #tpu.memory_space<vmem>>, %arg10: memref<1x8xf32, #tpu.memory_space<vmem>>, %arg11: memref<8x1xf32, #tpu.memory_space<vmem>>, %arg12: memref<1x1xf32, #tpu.memory_space<vmem>>, %arg13: memref<2x1xf32, #tpu.memory_space<vmem>>) attributes {dimension_semantics = [#tpu.dimension_semantics<parallel>], iteration_bounds = array<i64: 1>, scalar_prefetch = 0 : i64, scratch_operands = 0 : i64, tpu.core_type = #tpu.core_type<tc>, window_params = [{transform_indices = @transform_0, window_bounds = array<i64: 2, 16, 16>}, {transform_indices = @transform_1, window_bounds = array<i64: 2, 1, 16>}, {transform_indices = @transform_2, window_bounds = array<i64: 2, 1, 16>}, {transform_indices = @transform_3, window_bounds = array<i64: 2, 16, 16>}, {pipeline_mode = #tpu.pipeline_mode<synchronous>, transform_indices = @transform_4, window_bounds = array<i64: 1, 16>}, {pipeline_mode = #tpu.pipeline_mode<synchronous>, transform_indices = @transform_5, window_bounds = array<i64: 1, 16>}, {pipeline_mode = #tpu.pipeline_mode<synchronous>, transform_indices = @transform_6, window_bounds = array<i64: 16, 16>}, {pipeline_mode = #tpu.pipeline_mode<synchronous>, transform_indices = @transform_7, window_bounds = array<i64: 1, 16>}, {pipeline_mode = #tpu.pipeline_mode<synchronous>, transform_indices = @transform_8, window_bounds = array<i64: 16, 8>}, {pipeline_mode = #tpu.pipeline_mode<synchronous>, transform_indices = @transform_9, window_bounds = array<i64: 1, 8>}, {pipeline_mode = #tpu.pipeline_mode<synchronous>, transform_indices = @transform_10, window_bounds = array<i64: 8, 1>}, {pipeline_mode = #tpu.pipeline_mode<synchronous>, transform_indices = @transform_11, window_bounds = array<i64: 1, 1>}, {transform_indices = @transform_12, window_bounds = array<i64: 2, 1>}]} {
    %c0 = arith.constant 0 : index
    %c0_0 = arith.constant 0 : index
    %c0_1 = arith.constant 0 : index
    %0 = vector.load %arg1[%c0, %c0_0, %c0_1] : memref<2x16x16xi8, #tpu.memory_space<vmem>>, vector<2x16x16xi8>
    %1 = arith.sitofp %0 : vector<2x16x16xi8> to vector<2x16x16xbf16>
    %c0_2 = arith.constant 0 : index
    %c0_3 = arith.constant 0 : index
    %c0_4 = arith.constant 0 : index
    %2 = vector.load %arg2[%c0_2, %c0_3, %c0_4] : memref<2x1x16xbf16, #tpu.memory_space<vmem>>, vector<2x1x16xbf16>
    "tpu.trace_start"() <{level = 10 : i32, message = "gij,gkj->gik"}> : () -> ()
    %cst = arith.constant dense<0.000000e+00> : vector<2x16x1xf32>
    %3 = tpu.matmul %1, %2, %cst {dimension_numbers = #tpu.dot_dimension_numbers<[2], [2], [1], [1], [0, 0, 0, 1, 1, 1], [0], [0]>} : vector<2x16x16xbf16>, vector<2x1x16xbf16>, vector<2x16x1xf32> -> vector<2x16x1xf32>
    "tpu.trace_stop"() : () -> ()
    %cst_5 = arith.constant 0.00787401571 : f32
    %4 = vector.broadcast %cst_5 : f32 to vector<2x16x1xf32>
    %5 = arith.mulf %3, %4 : vector<2x16x1xf32>
    %c0_6 = arith.constant 0 : index
    %c0_7 = arith.constant 0 : index
    %6 = vector.load %arg5[%c0_6, %c0_7] : memref<1x16xf32, #tpu.memory_space<vmem>>, vector<1x16xf32>
    %7 = vector.shape_cast %6 : vector<1x16xf32> to vector<1x1x16xf32>
    %8 = vector.broadcast %5 : vector<2x16x1xf32> to vector<2x16x16xf32>
    %9 = vector.broadcast %7 : vector<1x1x16xf32> to vector<2x16x16xf32>
    %10 = arith.mulf %8, %9 : vector<2x16x16xf32>
    %c0_8 = arith.constant 0 : index
    %c0_9 = arith.constant 0 : index
    %11 = vector.load %arg6[%c0_8, %c0_9] : memref<1x16xf32, #tpu.memory_space<vmem>>, vector<1x16xf32>
    %12 = vector.shape_cast %11 : vector<1x16xf32> to vector<1x1x16xf32>
    %13 = vector.broadcast %12 : vector<1x1x16xf32> to vector<2x16x16xf32>
    %14 = arith.addf %10, %13 : vector<2x16x16xf32>
    %cst_10 = arith.constant 0.000000e+00 : f32
    %15 = vector.broadcast %cst_10 : f32 to vector<2x16x16xf32>
    %16 = arith.maximumf %14, %15 : vector<2x16x16xf32>
    %c0_11 = arith.constant 0 : index
    %c0_12 = arith.constant 0 : index
    %c0_13 = arith.constant 0 : index
    %17 = vector.load %arg4[%c0_11, %c0_12, %c0_13] : memref<2x16x16xi8, #tpu.memory_space<vmem>>, vector<2x16x16xi8>
    %18 = arith.sitofp %17 : vector<2x16x16xi8> to vector<2x16x16xf32>
    %cst_14 = arith.constant 1.66666663 : f32
    %19 = vector.broadcast %cst_14 : f32 to vector<2x16x16xf32>
    %20 = arith.mulf %18, %19 : vector<2x16x16xf32>
    %21 = arith.mulf %16, %20 : vector<2x16x16xf32>
    %c0_15 = arith.constant 0 : index
    %c0_16 = arith.constant 0 : index
    %c0_17 = arith.constant 0 : index
    %22 = vector.load %arg3[%c0_15, %c0_16, %c0_17] : memref<2x1x16xbf16, #tpu.memory_space<vmem>>, vector<2x1x16xbf16>
    %23 = arith.truncf %21 : vector<2x16x16xf32> to vector<2x16x16xbf16>
    "tpu.trace_start"() <{level = 10 : i32, message = "gkj,gjf->gkf"}> : () -> ()
    %cst_18 = arith.constant dense<0.000000e+00> : vector<2x1x16xf32>
    %24 = tpu.matmul %22, %23, %cst_18 {dimension_numbers = #tpu.dot_dimension_numbers<[2], [1], [1], [2], [0, 0, 0, 1, 1, 2], [0], [0]>} : vector<2x1x16xbf16>, vector<2x16x16xbf16>, vector<2x1x16xf32> -> vector<2x1x16xf32>
    "tpu.trace_stop"() : () -> ()
    %25 = vector.shape_cast %24 : vector<2x1x16xf32> to vector<2x16xf32>
    %c0_19 = arith.constant 0 : index
    %c0_20 = arith.constant 0 : index
    %26 = vector.load %arg7[%c0_19, %c0_20] : memref<16x16xf32, #tpu.memory_space<vmem>>, vector<16x16xf32>
    %cst_21 = arith.constant dense<0.000000e+00> : vector<2x16xf32>
    %27 = tpu.matmul %25, %26, %cst_21 {dimension_numbers = #tpu.dot_dimension_numbers<[1], [0], [0], [1], [0, 0, 1, 1], [], []>} : vector<2x16xf32>, vector<16x16xf32>, vector<2x16xf32> -> vector<2x16xf32>
    %c0_22 = arith.constant 0 : index
    %c0_23 = arith.constant 0 : index
    %28 = vector.load %arg8[%c0_22, %c0_23] : memref<1x16xf32, #tpu.memory_space<vmem>>, vector<1x16xf32>
    %29 = vector.broadcast %28 : vector<1x16xf32> to vector<2x16xf32>
    %30 = arith.addf %27, %29 : vector<2x16xf32>
    %cst_24 = arith.constant 0.000000e+00 : f32
    %31 = vector.broadcast %cst_24 : f32 to vector<2x16xf32>
    %32 = arith.maximumf %30, %31 : vector<2x16xf32>
    %c0_25 = arith.constant 0 : index
    %c0_26 = arith.constant 0 : index
    %33 = vector.load %arg9[%c0_25, %c0_26] : memref<16x8xf32, #tpu.memory_space<vmem>>, vector<16x8xf32>
    %cst_27 = arith.constant dense<0.000000e+00> : vector<2x8xf32>
    %34 = tpu.matmul %32, %33, %cst_27 {dimension_numbers = #tpu.dot_dimension_numbers<[1], [0], [0], [1], [0, 0, 1, 1], [], []>} : vector<2x16xf32>, vector<16x8xf32>, vector<2x8xf32> -> vector<2x8xf32>
    %c0_28 = arith.constant 0 : index
    %c0_29 = arith.constant 0 : index
    %35 = vector.load %arg10[%c0_28, %c0_29] : memref<1x8xf32, #tpu.memory_space<vmem>>, vector<1x8xf32>
    %36 = vector.broadcast %35 : vector<1x8xf32> to vector<2x8xf32>
    %37 = arith.addf %34, %36 : vector<2x8xf32>
    %cst_30 = arith.constant 0.000000e+00 : f32
    %38 = vector.broadcast %cst_30 : f32 to vector<2x8xf32>
    %39 = arith.maximumf %37, %38 : vector<2x8xf32>
    %c0_31 = arith.constant 0 : index
    %c0_32 = arith.constant 0 : index
    %40 = vector.load %arg11[%c0_31, %c0_32] : memref<8x1xf32, #tpu.memory_space<vmem>>, vector<8x1xf32>
    %cst_33 = arith.constant dense<0.000000e+00> : vector<2x1xf32>
    %41 = tpu.matmul %39, %40, %cst_33 {dimension_numbers = #tpu.dot_dimension_numbers<[1], [0], [0], [1], [0, 0, 1, 1], [], []>} : vector<2x8xf32>, vector<8x1xf32>, vector<2x1xf32> -> vector<2x1xf32>
    %c0_34 = arith.constant 0 : index
    %c0_35 = arith.constant 0 : index
    %42 = vector.load %arg12[%c0_34, %c0_35] : memref<1x1xf32, #tpu.memory_space<vmem>>, vector<1x1xf32>
    %43 = vector.broadcast %42 : vector<1x1xf32> to vector<2x1xf32>
    %44 = arith.addf %41, %43 : vector<2x1xf32>
    %c0_36 = arith.constant 0 : index
    %c0_37 = arith.constant 0 : index
    %45 = vector.load %arg13[%c0_36, %c0_37] : memref<2x1xf32, #tpu.memory_space<vmem>>, vector<2x1xf32>
    tpu.vector_store %arg13[%c0_36, %c0_37], %44 {strides = array<i32>} : memref<2x1xf32, #tpu.memory_space<vmem>>, vector<2x1xf32>,
    return
  }
  func.func @transform_0(%arg0: i32) -> (i32, i32, i32) {
    %c0_i32 = arith.constant 0 : i32
    %c0_i32_0 = arith.constant 0 : i32
    %c0_i32_1 = arith.constant 0 : i32
    return %arg0, %c0_i32, %c0_i32_0 : i32, i32, i32
  }
  func.func @transform_1(%arg0: i32) -> (i32, i32, i32) {
    %c0_i32 = arith.constant 0 : i32
    %c0_i32_0 = arith.constant 0 : i32
    %c0_i32_1 = arith.constant 0 : i32
    return %arg0, %c0_i32, %c0_i32_0 : i32, i32, i32
  }
  func.func @transform_2(%arg0: i32) -> (i32, i32, i32) {
    %c0_i32 = arith.constant 0 : i32
    %c0_i32_0 = arith.constant 0 : i32
    %c0_i32_1 = arith.constant 0 : i32
    return %arg0, %c0_i32, %c0_i32_0 : i32, i32, i32
  }
  func.func @transform_3(%arg0: i32) -> (i32, i32, i32) {
    %c0_i32 = arith.constant 0 : i32
    %c0_i32_0 = arith.constant 0 : i32
    %c0_i32_1 = arith.constant 0 : i32
    return %arg0, %c0_i32, %c0_i32_0 : i32, i32, i32
  }
  func.func @transform_4(%arg0: i32) -> (i32, i32) {
    %c0_i32 = arith.constant 0 : i32
    %c0_i32_0 = arith.constant 0 : i32
    %c0_i32_1 = arith.constant 0 : i32
    return %c0_i32, %c0_i32_0 : i32, i32
  }
  func.func @transform_5(%arg0: i32) -> (i32, i32) {
    %c0_i32 = arith.constant 0 : i32
    %c0_i32_0 = arith.constant 0 : i32
    %c0_i32_1 = arith.constant 0 : i32
    return %c0_i32, %c0_i32_0 : i32, i32
  }
  func.func @transform_6(%arg0: i32) -> (i32, i32) {
    %c0_i32 = arith.constant 0 : i32
    %c0_i32_0 = arith.constant 0 : i32
    %c0_i32_1 = arith.constant 0 : i32
    return %c0_i32, %c0_i32_0 : i32, i32
  }
  func.func @transform_7(%arg0: i32) -> (i32, i32) {
    %c0_i32 = arith.constant 0 : i32
    %c0_i32_0 = arith.constant 0 : i32
    %c0_i32_1 = arith.constant 0 : i32
    return %c0_i32, %c0_i32_0 : i32, i32
  }
  func.func @transform_8(%arg0: i32) -> (i32, i32) {
    %c0_i32 = arith.constant 0 : i32
    %c0_i32_0 = arith.constant 0 : i32
    %c0_i32_1 = arith.constant 0 : i32
    return %c0_i32, %c0_i32_0 : i32, i32
  }
  func.func @transform_9(%arg0: i32) -> (i32, i32) {
    %c0_i32 = arith.constant 0 : i32
    %c0_i32_0 = arith.constant 0 : i32
    %c0_i32_1 = arith.constant 0 : i32
    return %c0_i32, %c0_i32_0 : i32, i32
  }
  func.func @transform_10(%arg0: i32) -> (i32, i32) {
    %c0_i32 = arith.constant 0 : i32
    %c0_i32_0 = arith.constant 0 : i32
    %c0_i32_1 = arith.constant 0 : i32
    return %c0_i32, %c0_i32_0 : i32, i32
  }
  func.func @transform_11(%arg0: i32) -> (i32, i32) {
    %c0_i32 = arith.constant 0 : i32
    %c0_i32_0 = arith.constant 0 : i32
    %c0_i32_1 = arith.constant 0 : i32
    return %c0_i32, %c0_i32_0 : i32, i32
  }
  func.func @transform_12(%arg0: i32) -> (i32, i32) {
    %c0_i32 = arith.constant 0 : i32
    %c0_i32_0 = arith.constant 0 : i32
    return %arg0, %c0_i32 : i32, i32
  }
}

</mosaic_0001>

<bundles_post_ra>
// kernel: tpu_custom_call.1
= control target key start
LH: loop header
LB: loop body
LE: loop exit
PB: predicated region body
PF: predicated region fallthrough
CT: control target
= control target key end

     0   :  { %vm59_vm0 = vcmask 130048   ;;  %v671_v0 = vmov 0.0   ;;  %vm672_vm1 = vmmov 0   ;;  %v673_v15 = vmov 0   ;;  %s827_s1 = inlined_call_operand.vmem [shape: bf16[2,1,16], index: 1, kind: input, shape index: {}]   ;;  %s828_s0 = inlined_call_operand.vmem [shape: s8[2,16,16], index: 0, kind: input, shape index: {}]   ;;  %s829_s3 = inlined_call_operand.vmem [shape: s8[2,16,16], index: 3, kind: input, shape index: {}]   ;;  %s830_s4 = inlined_call_operand.vmem [shape: f32[1,16], index: 4, kind: input, shape index: {}]   ;;  %s831_s5 = inlined_call_operand.vmem [shape: f32[1,16], index: 5, kind: input, shape index: {}]   ;;  %s832_s6 = inlined_call_operand.vmem [shape: f32[16,16], index: 6, kind: input, shape index: {}]   ;;  %s833_s2 = inlined_call_operand.vmem [shape: bf16[2,1,16], index: 2, kind: input, shape index: {}]   ;;  %s834_s8 = inlined_call_operand.vmem [shape: f32[16,8], index: 8, kind: input, shape index: {}]   ;;  %s835_s7 = inlined_call_operand.vmem [shape: f32[1,16], index: 7, kind: input, shape index: {}]   ;;  %s836_s10 = inlined_call_operand.vmem [shape: f32[8,1], index: 10, kind: input, shape index: {}]   ;;  %s837_s11 = inlined_call_operand.<no memory space> [shape: f32[1,1], index: 11, kind: input, shape index: {}]   ;;  %s838_s9 = inlined_call_operand.vmem [shape: f32[1,8], index: 9, kind: input, shape index: {}]   ;;  %s839_s12 = inlined_call_operand.vmem [shape: f32[2,1], index: 12, kind: output, shape index: {}]  }
   0x1   :  { %615 = vmatprep.subr.bf16.mxu0 %v671_v0  ;;  %621 = vmatprep.subr.bf16.mxu1 %v671_v0  ;;  %v52_v1 = vld [vmem:[%s827_s1] sm:$0x1]  ;;  %v53_v2 = vld [vmem:[%s827_s1 + $0x1] sm:$0x1]  ;;  %v45_v6 = vld [vmem:[%s828_s0 + $0x2] sm:$0x3] }
   0x2   :  { %v44_v3 = vld [vmem:[%s828_s0] sm:$0x3]  ;;  %v64_v4 = vsel %vm59_vm0, %v52_v1, 0  ;;  %v116_v5 = vsel %vm59_vm0, %v53_v2, 0  ;;  %617 = vmatprep.mubr.msk.bf16.mxu0 %vm672_vm1, %v671_v0  ;;  %623 = vmatprep.mubr.msk.bf16.mxu1 %vm672_vm1, %v671_v0  ;;  %v46_v8 = vld [vmem:[%s828_s0 + $0x4] sm:$0x3]  ;;  %v49_v9 = vunpack.c.l.s8.bf16 %v45_v6 }
   0x3   :  { %v48_v7 = vunpack.c.l.s8.bf16 %v44_v3  ;;  %616 = vmatpush3.bf16.xpose.msra.mxu0 %v64_v4  ;;  %622 = vmatpush3.bf16.xpose.msra.mxu1 %v116_v5  ;;  %v47_v10 = vld [vmem:[%s828_s0 + $0x6] sm:$0x3]  ;;  %v50_v11 = vunpack.c.l.s8.bf16 %v46_v8  ;;  %v581_v30 = vld [vmem:[%s830_s4] ss:$0 sm:$0xff]  ;;  %v320_v1 = vld [vmem:[%s832_s6 + $0x8] sm:$0xff]  ;;  %vm331_vm2 = vcmask 1041409  }
   0x4   :  { %v51_v12 = vunpack.c.l.s8.bf16 %v47_v10  ;;  %627 = vmatprep.subr.bf16.mxu0 %v671_v0  ;;  %633 = vmatprep.subr.bf16.mxu1 %v671_v0  ;;  %v664_v28 = vld [vmem:[%s829_s3] sm:$0xff]   ;;  %vm497_vm3 = vcmask 64512   ;;  %vm571_vm4 = vcmask 1024  }
   0x5   :  { %v577_v13 = vcombine.low %v48_v7, %v49_v9  ;;  %670 = vset.pattern.permute.xlu1 %v673_v15  ;;  %669 = vset.pattern.permute.xlu0 %v673_v15  ;;  %v597_v29 = vunpack.c.2.s8 %v664_v28  ;;  %v593_v31 = vunpack.c.0.s8 %v664_v28  ;;  %v598_v32 = vunpack.c.3.s8 %v664_v28  ;;  %v582_v34 = vld [vmem:[%s831_s5] ss:$0 sm:$0xff]  ;;  %v230_v4 = vld [vmem:[%s833_s2 + $0x1] sm:$0x1]  ;;  %v407_v9 = vld [vmem:[%s834_s8 + $0x8] sm:$0xff] }
   0x6   :  { %v579_v14 = vcombine.low %v50_v11, %v51_v12  ;;  %v594_v33 = vunpack.c.1.s8 %v664_v28  ;;  %v319_v63 = vld [vmem:[%s832_s6] sm:$0xff]  ;;  %v674_v7 = vmov 0.0|0.0  }
   0x7   :  { %v219_v37 = vcvt.s32.f32 %v597_v29  ;;  %v217_v40 = vcvt.s32.f32 %v593_v31  ;;  %v220_v41 = vcvt.s32.f32 %v598_v32  ;;  %v229_v5 = vld [vmem:[%s833_s2] sm:$0x1]  ;;  %v659_v6 = vpack.c.bf16 %v320_v1, %v319_v63 }
   0x8   :  { %v218_v42 = vcvt.s32.f32 %v594_v33  ;;  %v406_v8 = vld [vmem:[%s834_s8] sm:$0xff] }
   0x9   :  { %v223_v47 = vmul.f32 1.6666666, %v219_v37  ;;  %v221_v50 = vmul.f32 1.6666666, %v217_v40  ;;  %v224_v51 = vmul.f32 1.6666666, %v220_v41  ;;  %v662_v10 = vpack.c.bf16 %v407_v9, %v406_v8 }
   0xa   :  { %618 = vmatmul.mubr.msk.bf16.vlgmr.msra.gmra.mrb[0].mxu0 %vm59_vm0, %v577_v13  ;;  %624 = vmatmul.mubr.msk.bf16.vlgmr.msra.gmra.mrb[0].mxu1 %vm59_vm0, %v579_v14  ;;  %v222_v52 = vmul.f32 1.6666666, %v218_v42 }
   0xb   :  { %635 = vmatprep.mubr.msk.bf16.mxu1 %vm672_vm1, %v671_v0  ;;  %629 = vmatprep.mubr.msk.bf16.mxu0 %vm672_vm1, %v671_v0 }
  0xdd   :  { %v100_v16 = vpop.f32.mrb[0].mxu0  ;;  %v152_v17 = vpop.f32.mrb[0].mxu1 }
  0xde   :  { %v159_v18 = vmul.f32 0.007874016, %v100_v16  ;;  %v161_v19 = vmul.f32 0.007874016, %v152_v17  ;;  %v619_v20 = vpop.f32.mrb[1].mxu0  ;;  %v625_v21 = vpop.f32.mrb[1].mxu1 }
  0xdf   :  { %v103_v22 = vpop.f32.mrb[2].mxu0  ;;  %v155_v23 = vpop.f32.mrb[2].mxu1  ;;  %v585_v21 = vld [vmem:[%s835_s7] ss:$0 sm:$0xff] }
  0xe0   :  { %176 = vperm.xlu0 %669, %v161_v19   ;;  %v626_v24 = vpop.f32.mrb[3].mxu1  ;;  %166 = vperm.xlu1 %670, %v159_v18   ;;  %v620_v25 = vpop.f32.mrb[3].mxu0  ;;  %v160_v26 = vmul.f32 0.007874016, %v103_v22  ;;  %v162_v27 = vmul.f32 0.007874016, %v155_v23 }
  0xe4   :  { %181 = vperm.xlu0 %669, %v162_v27   ;;  %171 = vperm.xlu1 %670, %v160_v26   ;;  %v489_v26 = vld [vmem:[%s836_s10] sm:$0xff]  ;;  %v17_v27 = vstv %s837_s11 }
  0xe5   :  { %18 = vst [vmem:[#allocation2] sm:$0x1] %v17_v27 }
  0xec   :  { %v589_v32 = vld [vmem:[#allocation2] ss:$0 sm:$0xff] }
 0x15f   :  { %v177_v35 = vpop.permute.xlu0 %176  ;;  %v167_v36 = vpop.permute.xlu1 %166 }
 0x160   :  { %v192_v38 = vmul.f32 %v581_v30, %v177_v35  ;;  %v190_v39 = vmul.f32 %v581_v30, %v167_v36 }
 0x162   :  { %v203_v43 = vadd.f32 %v582_v34, %v192_v38  ;;  %v201_v44 = vadd.f32 %v582_v34, %v190_v39 }
 0x163   :  { %v182_v45 = vpop.permute.xlu0 %181  ;;  %v172_v46 = vpop.permute.xlu1 %171 }
 0x164   :  { %v193_v48 = vmul.f32 %v581_v30, %v182_v45  ;;  %v191_v49 = vmul.f32 %v581_v30, %v172_v46  ;;  %v207_v53 = vmax.f32 %v203_v43, 0.0  ;;  %v205_v54 = vmax.f32 %v201_v44, 0.0 }
 0x166   :  { %v204_v55 = vadd.f32 %v582_v34, %v193_v48  ;;  %v202_v56 = vadd.f32 %v582_v34, %v191_v49  ;;  %v227_v59 = vmul.f32 %v223_v47, %v207_v53  ;;  %v225_v60 = vmul.f32 %v221_v50, %v205_v54 }
 0x168   :  { %v208_v57 = vmax.f32 %v204_v55, 0.0  ;;  %v206_v58 = vmax.f32 %v202_v56, 0.0 }
 0x16a   :  { %v228_v61 = vmul.f32 %v224_v51, %v208_v57  ;;  %v226_v62 = vmul.f32 %v222_v52, %v206_v58 }
 0x16c   :  { %v232_v2 = vpack.c.bf16 %v228_v61, %v227_v59  ;;  %v231_v3 = vpack.c.bf16 %v226_v62, %v225_v60 }
 0x16e   :  { %628 = vmatpush3.bf16.msra.mxu0 %v231_v3  ;;  %634 = vmatpush3.bf16.msra.mxu1 %v232_v2 }
 0x16f   :  { %658 = vmatprep.subr.bf16.mxu0 %v674_v7  ;;  %661 = vmatprep.subr.bf16.mxu1 %v674_v7 }
 0x171   :  { %636 = vmatmul.mubr.msk.bf16.vlgmr.msra.gmra.mrb[4].mxu1 %vm59_vm0, %v230_v4  ;;  %630 = vmatmul.mubr.msk.bf16.vlgmr.msra.gmra.mrb[4].mxu0 %vm59_vm0, %v229_v5 }
 0x172   :  { %660 = vmatpush3.bf16.msra.mxu0 %v659_v6  ;;  %643 = vmatprep.mubr.msk.f32.mxu0 %vm672_vm1, %v671_v0 }
 0x173   :  { %650 = vmatprep.mubr.msk.f32.mxu1 %vm672_vm1, %v671_v0  ;;  %653 = vmatprep.subr.mxu0 %v671_v0 }
 0x174   :  { %663 = vmatpush3.bf16.msra.mxu1 %v662_v10 }
 0x244   :  { %v313_v11 = vpop.f32.mrb[4].mxu1  ;;  %v270_v12 = vpop.f32.mrb[4].mxu0 }
 0x245   :  { %v330_v13 = vrot.slane %v313_v11, 7  ;;  %v637_v14 = vpop.f32.mrb[5].mxu1  ;;  %v631_v15 = vpop.f32.mrb[5].mxu0 }
 0x246   :  { %v316_v16 = vpop.f32.mrb[6].mxu1  ;;  %v273_v17 = vpop.f32.mrb[6].mxu0 }
 0x247   :  { %v332_v18 = vsel %vm331_vm2, %v330_v13, %v270_v12  ;;  %v638_v19 = vpop.f32.mrb[7].mxu1  ;;  %v632_v20 = vpop.f32.mrb[7].mxu0 }
 0x248   :  { %644 = vmatmul.mubr.msk.f32.vlgmr.msra.gmra.mrb[8].mxu0 %vm59_vm0, %v332_v18 }
 0x249   :  { %655 = vmatprep.mubr.msk.f32.mxu0 %vm672_vm1, %v671_v0  ;;  %654 = vmatpush3.msra.mxu0 %v489_v26  ;;  %v587_v0 = vld [vmem:[%s838_s9] ss:$0 sm:$0xff] }
 0x31b   :  { %v401_v22 = vpop.f32.mrb[8].mxu0 }
 0x31c   :  { %v402_v23 = vadd.f32 %v585_v21, %v401_v22  ;;  %v645_v24 = vpop.f32.mrb[9].mxu0 }
 0x31e   :  { %v405_v25 = vmax.f32 %v402_v23, 0.0 }
 0x320   :  { %651 = vmatmul.mubr.msk.f32.vlgmr.msra.gmra.mrb[8].mxu1 %vm59_vm0, %v405_v25 }
 0x3f3   :  { %v484_v28 = vpop.f32.mrb[8].mxu1 }
 0x3f4   :  { %v485_v29 = vadd.f32 %v587_v0, %v484_v28  ;;  %v652_v30 = vpop.f32.mrb[9].mxu1 }
 0x3f6   :  { %v488_v31 = vmax.f32 %v485_v29, 0.0 }
 0x3f8   :  { %656 = vmatmul.mubr.msk.f32.vlgmr.msra.gmra.mrb[10].mxu0 %vm497_vm3, %v488_v31 }
 0x4cb   :  { %v567_v33 = vpop.f32.mrb[10].mxu0 }
 0x4cc   :  { %v568_v34 = vadd.f32 %v589_v32, %v567_v33  ;;  %v657_v35 = vpop.f32.mrb[11].mxu0 }
 0x4ce   :  { %572 = vst.msk [vmem:[%s839_s12] sm:$0x3] %vm571_vm4, %v568_v34 }

</bundles_post_ra>
